<compile_context>
chip_gen: v5e
topology: v5e:2x2
jax: 0.10.0
libtpu: 0.0.40
codegen_flags: <defaults>
</compile_context>

<pallas_src>
import math
from functools import partial

import jax
import jax.numpy as jnp
from jax.experimental import pallas as pl
from jax.experimental.pallas import tpu as pltpu


def _self_attention_kernel(x_ref, wqkv_ref, bqkv_ref, wo_ref, bo_ref, o_ref,
                           *, num_heads):
    """One grid step: a block of Bb batch elements, full sequence."""
    Bb, S, E = x_ref.shape
    H = num_heads
    D = E // H
    mxu_dtype = x_ref.dtype           # keep bf16 inputs in bf16 on the MXU

    # ---- fused QKV projection (single wide matmul, f32 accumulation) -------
    x2d = x_ref[...].reshape(Bb * S, E)
    qkv = jnp.dot(x2d, wqkv_ref[...], preferred_element_type=jnp.float32)
    qkv = qkv + bqkv_ref[...].astype(jnp.float32)           # (Bb*S, 3E) f32
    # 1/sqrt(D) query scaling is already folded into W_q / b_q by the wrapper.
    q = qkv[:, :E].astype(mxu_dtype).reshape(Bb, S, E)
    k = qkv[:, E:2 * E].astype(mxu_dtype).reshape(Bb, S, E)
    v = qkv[:, 2 * E:].astype(mxu_dtype).reshape(Bb, S, E)

    wo = wo_ref[...]                                         # (E, E), resident

    # ---- per-head attention + fused output projection ----------------------
    # TODO(synk): for long S, tile keys flash-style (running max/sum) so the
    #             (Bb, S, S) f32 score block never exceeds the VMEM budget.
    # TODO(synk): attn_mask / key_padding_mask (None in this forward) omitted.
    acc = jnp.zeros((Bb * S, E), jnp.float32)
    for h in range(H):
        qh = q[:, :, h * D:(h + 1) * D]                      # (Bb, S, D)
        kh = k[:, :, h * D:(h + 1) * D]
        vh = v[:, :, h * D:(h + 1) * D]
        s = jnp.einsum('bqd,bkd->bqk', qh, kh,
                       preferred_element_type=jnp.float32)   # (Bb, S, S) f32
        m = jnp.max(s, axis=-1, keepdims=True)
        p = jnp.exp(s - m)                                   # unnormalized
        l = jnp.sum(p, axis=-1, keepdims=True)               # (Bb, S, 1)
        pv = jnp.einsum('bqk,bkd->bqd', p.astype(mxu_dtype), vh,
                        preferred_element_type=jnp.float32)  # (Bb, S, D)
        pv = pv * pl.reciprocal(l, approx=True)              # normalize on (S,D), EUP
        woh = wo[h * D:(h + 1) * D, :]                       # (D, E)
        acc = acc + jnp.dot(pv.reshape(Bb * S, D).astype(mxu_dtype), woh,
                            preferred_element_type=jnp.float32)

    out = acc + bo_ref[...].astype(jnp.float32)              # (Bb*S, E)
    o_ref[...] = out.reshape(Bb, S, E).astype(o_ref.dtype)


def _pick_batch_block(B, S, E, itemsize):
    """Largest divisor of B whose per-step intermediates fit a VMEM budget."""
    per_b = 4 * (3 * S * E + S * S + S * E) + 2 * 2 * S * E * itemsize
    budget = 24 * 1024 * 1024
    fitting = [d for d in range(1, B + 1) if B % d == 0 and d * per_b <= budget]
    return fitting[-1] if fitting else 1


def self_attention(x, in_proj_w, in_proj_b, out_proj_w, out_proj_b, num_heads):
    """Equivalent of SelfAttention.forward(x) (attn_mask=None, key_padding_mask=None)."""
    B, S, E = x.shape
    assert E % num_heads == 0
    D = E // num_heads
    scale = 1.0 / math.sqrt(D)

    # Glue (plain JAX, outside the kernel): fold the query scale into W_q/b_q,
    # fuse the three projection weights/biases, pre-transpose to row-major.
    wq, wk, wv = in_proj_w[:E], in_proj_w[E:2 * E], in_proj_w[2 * E:]
    bq, bk, bv = in_proj_b[:E], in_proj_b[E:2 * E], in_proj_b[2 * E:]
    w_qkv = jnp.concatenate([wq * scale, wk, wv], axis=0).T.astype(x.dtype)  # (E, 3E)
    b_qkv = jnp.concatenate([bq * scale, bk, bv]).reshape(1, 3 * E)
    wo = out_proj_w.T.astype(x.dtype)                                        # (E, E)
    bo = out_proj_b.reshape(1, E)

    Bb = _pick_batch_block(B, S, E, x.dtype.itemsize)
    grid = (B // Bb,)

    kernel = partial(_self_attention_kernel, num_heads=num_heads)
    wspec = lambda shape: pl.BlockSpec(shape, lambda b: (0, 0))

    flops = 2 * B * (4 * S * E * E + 2 * S * S * E)
    transcendentals = B * num_heads * S * S
    bytes_accessed = (2 * x.size * x.dtype.itemsize
                      + (w_qkv.size + wo.size) * w_qkv.dtype.itemsize
                      + (b_qkv.size + bo.size) * 4)

    return pl.pallas_call(
        kernel,
        out_shape=jax.ShapeDtypeStruct((B, S, E), x.dtype),
        grid=grid,
        in_specs=[
            pl.BlockSpec((Bb, S, E), lambda b: (b, 0, 0)),   # x (batch block)
            wspec((E, 3 * E)),                               # fused W_qkv
            wspec((1, 3 * E)),                               # fused b_qkv
            wspec((E, E)),                                   # W_o
            wspec((1, E)),                                   # b_o
        ],
        out_specs=pl.BlockSpec((Bb, S, E), lambda b: (b, 0, 0)),
        compiler_params=pltpu.CompilerParams(
            dimension_semantics=("parallel",),
            vmem_limit_bytes=48 * 1024 * 1024,
        ),
        cost_estimate=pl.CostEstimate(
            flops=flops,
            transcendentals=transcendentals,
            bytes_accessed=bytes_accessed,
        ),
    )(x, w_qkv, b_qkv, wo, bo)


def _reference(x, in_proj_w, in_proj_b, out_proj_w, out_proj_b, num_heads):
    """Pure-JAX reference mirroring torch.nn.MultiheadAttention (eval, no masks)."""
    B, S, E = x.shape
    D = E // num_heads
    qkv = jnp.einsum('bse,fe->bsf', x, in_proj_w) + in_proj_b   # (B, S, 3E)
    q, k, v = jnp.split(qkv, 3, axis=-1)
    def heads(t):
        return t.reshape(B, S, num_heads, D).transpose(0, 2, 1, 3)  # (B, H, S, D)
    q, k, v = heads(q), heads(k), heads(v)
    s = jnp.einsum('bhqd,bhkd->bhqk', q, k) / math.sqrt(D)
    p = jax.nn.softmax(s, axis=-1)
    o = jnp.einsum('bhqk,bhkd->bhqd', p, v).transpose(0, 2, 1, 3).reshape(B, S, E)
    return jnp.einsum('bse,fe->bsf', o, out_proj_w) + out_proj_b


if __name__ == "__main__":
    B, S, E, H = 2, 8, 32, 4

    key = jax.random.PRNGKey(0)
    kx, kw_in, kb_in, kw_out, kb_out = jax.random.split(key, 5)

    x = jax.random.normal(kx, (B, S, E), dtype=jnp.float32)
    # Deterministic synthetic parameters (shapes match nn.MultiheadAttention):
    in_proj_w = jax.random.normal(kw_in, (3 * E, E), dtype=jnp.float32) * (1.0 / math.sqrt(E))
    in_proj_b = jax.random.normal(kb_in, (3 * E,), dtype=jnp.float32) * 0.02
    out_proj_w = jax.random.normal(kw_out, (E, E), dtype=jnp.float32) * (1.0 / math.sqrt(E))
    out_proj_b = jax.random.normal(kb_out, (E,), dtype=jnp.float32) * 0.02

    out = self_attention(x, in_proj_w, in_proj_b, out_proj_w, out_proj_b, H)
    out = jax.block_until_ready(out)

    ref = _reference(x, in_proj_w, in_proj_b, out_proj_w, out_proj_b, H)
    assert out.shape == (B, S, E)
    # Tolerance loosened slightly vs f32 reference because the softmax
    # denominator uses the approximate (EUP) reciprocal.
    assert jnp.allclose(out, ref, rtol=5e-3, atol=5e-3), "mismatch vs reference"

    print("KERNEL_OK")
</pallas_src>

<mosaic_0001>
module attributes {stable_mosaic.version = 11 : i64} {
  func.func @_self_attention_kernel(%arg0: i32, %arg1: memref<2x8x32xf32, #tpu.memory_space<vmem>>, %arg2: memref<32x96xf32, #tpu.memory_space<vmem>>, %arg3: memref<1x96xf32, #tpu.memory_space<vmem>>, %arg4: memref<32x32xf32, #tpu.memory_space<vmem>>, %arg5: memref<1x32xf32, #tpu.memory_space<vmem>>, %arg6: memref<2x8x32xf32, #tpu.memory_space<vmem>>) attributes {dimension_semantics = [#tpu.dimension_semantics<parallel>], iteration_bounds = array<i64: 1>, scalar_prefetch = 0 : i64, scratch_operands = 0 : i64, tpu.core_type = #tpu.core_type<tc>, window_params = [{transform_indices = @transform_0, window_bounds = array<i64: 2, 8, 32>}, {pipeline_mode = #tpu.pipeline_mode<synchronous>, transform_indices = @transform_1, window_bounds = array<i64: 32, 96>}, {pipeline_mode = #tpu.pipeline_mode<synchronous>, transform_indices = @transform_2, window_bounds = array<i64: 1, 96>}, {pipeline_mode = #tpu.pipeline_mode<synchronous>, transform_indices = @transform_3, window_bounds = array<i64: 32, 32>}, {pipeline_mode = #tpu.pipeline_mode<synchronous>, transform_indices = @transform_4, window_bounds = array<i64: 1, 32>}, {transform_indices = @transform_5, window_bounds = array<i64: 2, 8, 32>}]} {
    %c0 = arith.constant 0 : index
    %c0_0 = arith.constant 0 : index
    %c0_1 = arith.constant 0 : index
    %0 = vector.load %arg1[%c0, %c0_0, %c0_1] : memref<2x8x32xf32, #tpu.memory_space<vmem>>, vector<2x8x32xf32>
    %1 = vector.shape_cast %0 : vector<2x8x32xf32> to vector<16x32xf32>
    %c0_2 = arith.constant 0 : index
    %c0_3 = arith.constant 0 : index
    %2 = vector.load %arg2[%c0_2, %c0_3] : memref<32x96xf32, #tpu.memory_space<vmem>>, vector<32x96xf32>
    %cst = arith.constant dense<0.000000e+00> : vector<16x96xf32>
    %3 = tpu.matmul %1, %2, %cst {dimension_numbers = #tpu.dot_dimension_numbers<[1], [0], [0], [1], [0, 0, 1, 1], [], []>} : vector<16x32xf32>, vector<32x96xf32>, vector<16x96xf32> -> vector<16x96xf32>
    %c0_4 = arith.constant 0 : index
    %c0_5 = arith.constant 0 : index
    %4 = vector.load %arg3[%c0_4, %c0_5] : memref<1x96xf32, #tpu.memory_space<vmem>>, vector<1x96xf32>
    %5 = vector.broadcast %4 : vector<1x96xf32> to vector<16x96xf32>
    %6 = arith.addf %3, %5 : vector<16x96xf32>
    %7 = vector.extract_strided_slice %6 {offsets = [0, 0], sizes = [16, 32], strides = [1, 1]} : vector<16x96xf32> to vector<16x32xf32>
    %8 = vector.shape_cast %7 : vector<16x32xf32> to vector<2x8x32xf32>
    %9 = vector.extract_strided_slice %6 {offsets = [0, 32], sizes = [16, 32], strides = [1, 1]} : vector<16x96xf32> to vector<16x32xf32>
    %10 = vector.shape_cast %9 : vector<16x32xf32> to vector<2x8x32xf32>
    %11 = vector.extract_strided_slice %6 {offsets = [0, 64], sizes = [16, 32], strides = [1, 1]} : vector<16x96xf32> to vector<16x32xf32>
    %12 = vector.shape_cast %11 : vector<16x32xf32> to vector<2x8x32xf32>
    %c0_6 = arith.constant 0 : index
    %c0_7 = arith.constant 0 : index
    %13 = vector.load %arg4[%c0_6, %c0_7] : memref<32x32xf32, #tpu.memory_space<vmem>>, vector<32x32xf32>
    %cst_8 = arith.constant 0.000000e+00 : f32
    %14 = vector.broadcast %cst_8 : f32 to vector<16x32xf32>
    %15 = vector.extract_strided_slice %8 {offsets = [0, 0, 0], sizes = [2, 8, 8], strides = [1, 1, 1]} : vector<2x8x32xf32> to vector<2x8x8xf32>
    %16 = vector.extract_strided_slice %10 {offsets = [0, 0, 0], sizes = [2, 8, 8], strides = [1, 1, 1]} : vector<2x8x32xf32> to vector<2x8x8xf32>
    %17 = vector.extract_strided_slice %12 {offsets = [0, 0, 0], sizes = [2, 8, 8], strides = [1, 1, 1]} : vector<2x8x32xf32> to vector<2x8x8xf32>
    "tpu.trace_start"() <{level = 10 : i32, message = "bqd,bkd->bqk"}> : () -> ()
    %cst_9 = arith.constant dense<0.000000e+00> : vector<2x8x8xf32>
    %18 = tpu.matmul %15, %16, %cst_9 {dimension_numbers = #tpu.dot_dimension_numbers<[2], [2], [1], [1], [0, 0, 0, 1, 1, 1], [0], [0]>} : vector<2x8x8xf32>, vector<2x8x8xf32>, vector<2x8x8xf32> -> vector<2x8x8xf32>
    "tpu.trace_stop"() : () -> ()
    %cst_10 = arith.constant dense<0xFF800000> : vector<2x8xf32>
    %19 = vector.multi_reduction <maximumf>, %18, %cst_10 [2] : vector<2x8x8xf32> to vector<2x8xf32>
    %20 = vector.shape_cast %19 : vector<2x8xf32> to vector<2x8x1xf32>
    %21 = vector.broadcast %20 : vector<2x8x1xf32> to vector<2x8x8xf32>
    %22 = arith.subf %18, %21 : vector<2x8x8xf32>
    %23 = math.exp %22 : vector<2x8x8xf32>
    %cst_11 = arith.constant dense<0.000000e+00> : vector<2x8xf32>
    %24 = vector.multi_reduction <add>, %23, %cst_11 [2] : vector<2x8x8xf32> to vector<2x8xf32>
    %25 = vector.shape_cast %24 : vector<2x8xf32> to vector<2x8x1xf32>
    "tpu.trace_start"() <{level = 10 : i32, message = "bqk,bkd->bqd"}> : () -> ()
    %cst_12 = arith.constant dense<0.000000e+00> : vector<2x8x8xf32>
    %26 = tpu.matmul %23, %17, %cst_12 {dimension_numbers = #tpu.dot_dimension_numbers<[2], [1], [1], [2], [0, 0, 0, 1, 1, 2], [0], [0]>} : vector<2x8x8xf32>, vector<2x8x8xf32>, vector<2x8x8xf32> -> vector<2x8x8xf32>
    "tpu.trace_stop"() : () -> ()
    %27 = tpu.reciprocal %25 {approx = true} : vector<2x8x1xf32> -> vector<2x8x1xf32>
    %28 = vector.broadcast %27 : vector<2x8x1xf32> to vector<2x8x8xf32>
    %29 = arith.mulf %26, %28 : vector<2x8x8xf32>
    %30 = vector.extract_strided_slice %13 {offsets = [0, 0], sizes = [8, 32], strides = [1, 1]} : vector<32x32xf32> to vector<8x32xf32>
    %31 = vector.shape_cast %29 : vector<2x8x8xf32> to vector<16x8xf32>
    %cst_13 = arith.constant dense<0.000000e+00> : vector<16x32xf32>
    %32 = tpu.matmul %31, %30, %cst_13 {dimension_numbers = #tpu.dot_dimension_numbers<[1], [0], [0], [1], [0, 0, 1, 1], [], []>} : vector<16x8xf32>, vector<8x32xf32>, vector<16x32xf32> -> vector<16x32xf32>
    %33 = arith.addf %14, %32 : vector<16x32xf32>
    %34 = vector.extract_strided_slice %8 {offsets = [0, 0, 8], sizes = [2, 8, 8], strides = [1, 1, 1]} : vector<2x8x32xf32> to vector<2x8x8xf32>
    %35 = vector.extract_strided_slice %10 {offsets = [0, 0, 8], sizes = [2, 8, 8], strides = [1, 1, 1]} : vector<2x8x32xf32> to vector<2x8x8xf32>
    %36 = vector.extract_strided_slice %12 {offsets = [0, 0, 8], sizes = [2, 8, 8], strides = [1, 1, 1]} : vector<2x8x32xf32> to vector<2x8x8xf32>
    "tpu.trace_start"() <{level = 10 : i32, message = "bqd,bkd->bqk"}> : () -> ()
    %cst_14 = arith.constant dense<0.000000e+00> : vector<2x8x8xf32>
    %37 = tpu.matmul %34, %35, %cst_14 {dimension_numbers = #tpu.dot_dimension_numbers<[2], [2], [1], [1], [0, 0, 0, 1, 1, 1], [0], [0]>} : vector<2x8x8xf32>, vector<2x8x8xf32>, vector<2x8x8xf32> -> vector<2x8x8xf32>
    "tpu.trace_stop"() : () -> ()
    %cst_15 = arith.constant dense<0xFF800000> : vector<2x8xf32>
    %38 = vector.multi_reduction <maximumf>, %37, %cst_15 [2] : vector<2x8x8xf32> to vector<2x8xf32>
    %39 = vector.shape_cast %38 : vector<2x8xf32> to vector<2x8x1xf32>
    %40 = vector.broadcast %39 : vector<2x8x1xf32> to vector<2x8x8xf32>
    %41 = arith.subf %37, %40 : vector<2x8x8xf32>
    %42 = math.exp %41 : vector<2x8x8xf32>
    %cst_16 = arith.constant dense<0.000000e+00> : vector<2x8xf32>
    %43 = vector.multi_reduction <add>, %42, %cst_16 [2] : vector<2x8x8xf32> to vector<2x8xf32>
    %44 = vector.shape_cast %43 : vector<2x8xf32> to vector<2x8x1xf32>
    "tpu.trace_start"() <{level = 10 : i32, message = "bqk,bkd->bqd"}> : () -> ()
    %cst_17 = arith.constant dense<0.000000e+00> : vector<2x8x8xf32>
    %45 = tpu.matmul %42, %36, %cst_17 {dimension_numbers = #tpu.dot_dimension_numbers<[2], [1], [1], [2], [0, 0, 0, 1, 1, 2], [0], [0]>} : vector<2x8x8xf32>, vector<2x8x8xf32>, vector<2x8x8xf32> -> vector<2x8x8xf32>
    "tpu.trace_stop"() : () -> ()
    %46 = tpu.reciprocal %44 {approx = true} : vector<2x8x1xf32> -> vector<2x8x1xf32>
    %47 = vector.broadcast %46 : vector<2x8x1xf32> to vector<2x8x8xf32>
    %48 = arith.mulf %45, %47 : vector<2x8x8xf32>
    %49 = vector.extract_strided_slice %13 {offsets = [8, 0], sizes = [8, 32], strides = [1, 1]} : vector<32x32xf32> to vector<8x32xf32>
    %50 = vector.shape_cast %48 : vector<2x8x8xf32> to vector<16x8xf32>
    %cst_18 = arith.constant dense<0.000000e+00> : vector<16x32xf32>
    %51 = tpu.matmul %50, %49, %cst_18 {dimension_numbers = #tpu.dot_dimension_numbers<[1], [0], [0], [1], [0, 0, 1, 1], [], []>} : vector<16x8xf32>, vector<8x32xf32>, vector<16x32xf32> -> vector<16x32xf32>
    %52 = arith.addf %33, %51 : vector<16x32xf32>
    %53 = vector.extract_strided_slice %8 {offsets = [0, 0, 16], sizes = [2, 8, 8], strides = [1, 1, 1]} : vector<2x8x32xf32> to vector<2x8x8xf32>
    %54 = vector.extract_strided_slice %10 {offsets = [0, 0, 16], sizes = [2, 8, 8], strides = [1, 1, 1]} : vector<2x8x32xf32> to vector<2x8x8xf32>
    %55 = vector.extract_strided_slice %12 {offsets = [0, 0, 16], sizes = [2, 8, 8], strides = [1, 1, 1]} : vector<2x8x32xf32> to vector<2x8x8xf32>
    "tpu.trace_start"() <{level = 10 : i32, message = "bqd,bkd->bqk"}> : () -> ()
    %cst_19 = arith.constant dense<0.000000e+00> : vector<2x8x8xf32>
    %56 = tpu.matmul %53, %54, %cst_19 {dimension_numbers = #tpu.dot_dimension_numbers<[2], [2], [1], [1], [0, 0, 0, 1, 1, 1], [0], [0]>} : vector<2x8x8xf32>, vector<2x8x8xf32>, vector<2x8x8xf32> -> vector<2x8x8xf32>
    "tpu.trace_stop"() : () -> ()
    %cst_20 = arith.constant dense<0xFF800000> : vector<2x8xf32>
    %57 = vector.multi_reduction <maximumf>, %56, %cst_20 [2] : vector<2x8x8xf32> to vector<2x8xf32>
    %58 = vector.shape_cast %57 : vector<2x8xf32> to vector<2x8x1xf32>
    %59 = vector.broadcast %58 : vector<2x8x1xf32> to vector<2x8x8xf32>
    %60 = arith.subf %56, %59 : vector<2x8x8xf32>
    %61 = math.exp %60 : vector<2x8x8xf32>
    %cst_21 = arith.constant dense<0.000000e+00> : vector<2x8xf32>
    %62 = vector.multi_reduction <add>, %61, %cst_21 [2] : vector<2x8x8xf32> to vector<2x8xf32>
    %63 = vector.shape_cast %62 : vector<2x8xf32> to vector<2x8x1xf32>
    "tpu.trace_start"() <{level = 10 : i32, message = "bqk,bkd->bqd"}> : () -> ()
    %cst_22 = arith.constant dense<0.000000e+00> : vector<2x8x8xf32>
    %64 = tpu.matmul %61, %55, %cst_22 {dimension_numbers = #tpu.dot_dimension_numbers<[2], [1], [1], [2], [0, 0, 0, 1, 1, 2], [0], [0]>} : vector<2x8x8xf32>, vector<2x8x8xf32>, vector<2x8x8xf32> -> vector<2x8x8xf32>
    "tpu.trace_stop"() : () -> ()
    %65 = tpu.reciprocal %63 {approx = true} : vector<2x8x1xf32> -> vector<2x8x1xf32>
    %66 = vector.broadcast %65 : vector<2x8x1xf32> to vector<2x8x8xf32>
    %67 = arith.mulf %64, %66 : vector<2x8x8xf32>
    %68 = vector.extract_strided_slice %13 {offsets = [16, 0], sizes = [8, 32], strides = [1, 1]} : vector<32x32xf32> to vector<8x32xf32>
    %69 = vector.shape_cast %67 : vector<2x8x8xf32> to vector<16x8xf32>
    %cst_23 = arith.constant dense<0.000000e+00> : vector<16x32xf32>
    %70 = tpu.matmul %69, %68, %cst_23 {dimension_numbers = #tpu.dot_dimension_numbers<[1], [0], [0], [1], [0, 0, 1, 1], [], []>} : vector<16x8xf32>, vector<8x32xf32>, vector<16x32xf32> -> vector<16x32xf32>
    %71 = arith.addf %52, %70 : vector<16x32xf32>
    %72 = vector.extract_strided_slice %8 {offsets = [0, 0, 24], sizes = [2, 8, 8], strides = [1, 1, 1]} : vector<2x8x32xf32> to vector<2x8x8xf32>
    %73 = vector.extract_strided_slice %10 {offsets = [0, 0, 24], sizes = [2, 8, 8], strides = [1, 1, 1]} : vector<2x8x32xf32> to vector<2x8x8xf32>
    %74 = vector.extract_strided_slice %12 {offsets = [0, 0, 24], sizes = [2, 8, 8], strides = [1, 1, 1]} : vector<2x8x32xf32> to vector<2x8x8xf32>
    "tpu.trace_start"() <{level = 10 : i32, message = "bqd,bkd->bqk"}> : () -> ()
    %cst_24 = arith.constant dense<0.000000e+00> : vector<2x8x8xf32>
    %75 = tpu.matmul %72, %73, %cst_24 {dimension_numbers = #tpu.dot_dimension_numbers<[2], [2], [1], [1], [0, 0, 0, 1, 1, 1], [0], [0]>} : vector<2x8x8xf32>, vector<2x8x8xf32>, vector<2x8x8xf32> -> vector<2x8x8xf32>
    "tpu.trace_stop"() : () -> ()
    %cst_25 = arith.constant dense<0xFF800000> : vector<2x8xf32>
    %76 = vector.multi_reduction <maximumf>, %75, %cst_25 [2] : vector<2x8x8xf32> to vector<2x8xf32>
    %77 = vector.shape_cast %76 : vector<2x8xf32> to vector<2x8x1xf32>
    %78 = vector.broadcast %77 : vector<2x8x1xf32> to vector<2x8x8xf32>
    %79 = arith.subf %75, %78 : vector<2x8x8xf32>
    %80 = math.exp %79 : vector<2x8x8xf32>
    %cst_26 = arith.constant dense<0.000000e+00> : vector<2x8xf32>
    %81 = vector.multi_reduction <add>, %80, %cst_26 [2] : vector<2x8x8xf32> to vector<2x8xf32>
    %82 = vector.shape_cast %81 : vector<2x8xf32> to vector<2x8x1xf32>
    "tpu.trace_start"() <{level = 10 : i32, message = "bqk,bkd->bqd"}> : () -> ()
    %cst_27 = arith.constant dense<0.000000e+00> : vector<2x8x8xf32>
    %83 = tpu.matmul %80, %74, %cst_27 {dimension_numbers = #tpu.dot_dimension_numbers<[2], [1], [1], [2], [0, 0, 0, 1, 1, 2], [0], [0]>} : vector<2x8x8xf32>, vector<2x8x8xf32>, vector<2x8x8xf32> -> vector<2x8x8xf32>
    "tpu.trace_stop"() : () -> ()
    %84 = tpu.reciprocal %82 {approx = true} : vector<2x8x1xf32> -> vector<2x8x1xf32>
    %85 = vector.broadcast %84 : vector<2x8x1xf32> to vector<2x8x8xf32>
    %86 = arith.mulf %83, %85 : vector<2x8x8xf32>
    %87 = vector.extract_strided_slice %13 {offsets = [24, 0], sizes = [8, 32], strides = [1, 1]} : vector<32x32xf32> to vector<8x32xf32>
    %88 = vector.shape_cast %86 : vector<2x8x8xf32> to vector<16x8xf32>
    %cst_28 = arith.constant dense<0.000000e+00> : vector<16x32xf32>
    %89 = tpu.matmul %88, %87, %cst_28 {dimension_numbers = #tpu.dot_dimension_numbers<[1], [0], [0], [1], [0, 0, 1, 1], [], []>} : vector<16x8xf32>, vector<8x32xf32>, vector<16x32xf32> -> vector<16x32xf32>
    %90 = arith.addf %71, %89 : vector<16x32xf32>
    %c0_29 = arith.constant 0 : index
    %c0_30 = arith.constant 0 : index
    %91 = vector.load %arg5[%c0_29, %c0_30] : memref<1x32xf32, #tpu.memory_space<vmem>>, vector<1x32xf32>
    %92 = vector.broadcast %91 : vector<1x32xf32> to vector<16x32xf32>
    %93 = arith.addf %90, %92 : vector<16x32xf32>
    %94 = vector.shape_cast %93 : vector<16x32xf32> to vector<2x8x32xf32>
    %c0_31 = arith.constant 0 : index
    %c0_32 = arith.constant 0 : index
    %c0_33 = arith.constant 0 : index
    %95 = vector.load %arg6[%c0_31, %c0_32, %c0_33] : memref<2x8x32xf32, #tpu.memory_space<vmem>>, vector<2x8x32xf32>
    tpu.vector_store %arg6[%c0_31, %c0_32, %c0_33], %94 {strides = array<i32>} : memref<2x8x32xf32, #tpu.memory_space<vmem>>, vector<2x8x32xf32>,
    return
  }
  func.func @transform_0(%arg0: i32) -> (i32, i32, i32) {
    %c0_i32 = arith.constant 0 : i32
    %c0_i32_0 = arith.constant 0 : i32
    %c0_i32_1 = arith.constant 0 : i32
    return %arg0, %c0_i32, %c0_i32_0 : i32, i32, i32
  }
  func.func @transform_1(%arg0: i32) -> (i32, i32) {
    %c0_i32 = arith.constant 0 : i32
    %c0_i32_0 = arith.constant 0 : i32
    %c0_i32_1 = arith.constant 0 : i32
    return %c0_i32, %c0_i32_0 : i32, i32
  }
  func.func @transform_2(%arg0: i32) -> (i32, i32) {
    %c0_i32 = arith.constant 0 : i32
    %c0_i32_0 = arith.constant 0 : i32
    %c0_i32_1 = arith.constant 0 : i32
    return %c0_i32, %c0_i32_0 : i32, i32
  }
  func.func @transform_3(%arg0: i32) -> (i32, i32) {
    %c0_i32 = arith.constant 0 : i32
    %c0_i32_0 = arith.constant 0 : i32
    %c0_i32_1 = arith.constant 0 : i32
    return %c0_i32, %c0_i32_0 : i32, i32
  }
  func.func @transform_4(%arg0: i32) -> (i32, i32) {
    %c0_i32 = arith.constant 0 : i32
    %c0_i32_0 = arith.constant 0 : i32
    %c0_i32_1 = arith.constant 0 : i32
    return %c0_i32, %c0_i32_0 : i32, i32
  }
  func.func @transform_5(%arg0: i32) -> (i32, i32, i32) {
    %c0_i32 = arith.constant 0 : i32
    %c0_i32_0 = arith.constant 0 : i32
    %c0_i32_1 = arith.constant 0 : i32
    return %arg0, %c0_i32, %c0_i32_0 : i32, i32, i32
  }
}

</mosaic_0001>

<bundles_post_ra>
// kernel: tpu_custom_call.1
= control target key start
LH: loop header
LB: loop body
LE: loop exit
PB: predicated region body
PF: predicated region fallthrough
CT: control target
= control target key end

     0   :  { %10 = vsyncpa [#allocation3], 0  ;;  %s1147_s0 = inlined_call_operand.hbm [shape: f32[2,8,32], index: 0, kind: input, shape index: {}]   ;;  %s1148_s1 = inlined_call_operand.hbm [shape: f32[32,96], index: 1, kind: input, shape index: {}]   ;;  %s1149_s2 = inlined_call_operand.vmem [shape: f32[1,96], index: 2, kind: input, shape index: {}]   ;;  %s1150_s3 = inlined_call_operand.hbm [shape: f32[32,32], index: 3, kind: input, shape index: {}]   ;;  %s1151_s4 = inlined_call_operand.vmem [shape: f32[1,32], index: 4, kind: input, shape index: {}]   ;;  %s1152_s5 = inlined_call_operand.hbm [shape: f32[2,8,32], index: 5, kind: output, shape index: {}]  }
   0x1   :  { %11 = vsyncpa [#allocation6], 0 }
   0x2   :  { %12 = vsyncpa [#allocation4], 0  ;;  %s30_s20 = sshll.u32 %s1148_s1, 4  ;;  %s966_s21 = smov [#allocation5]   ;;  %s31_s20 = int_to_ptr.hbm [resolvable:$true] %s30_s20 }
   0x3   :  { %s32_s22 = sshll.u32 %s966_s21, 4  ;;  %s17_s25 = sshll.u32 %s1147_s0, 4  ;;  %s33_s22 = int_to_ptr.vmem [resolvable:$true] %s32_s22  ;;  %s18_s25 = int_to_ptr.hbm [resolvable:$true] %s17_s25 }
   0x4   :  { %s967_s26 = smov 128   ;;  %s968_s27 = smov 8  }
   0x5   :  { %38 = dma.hbm_to_vmem [thread:$0]  %s31_s20, 512, %s33_s22, [#allocation6], %s967_s26, %s967_s26, %s968_s27  }
   0x6   :  { %s969_s28 = smov [#allocation2]   ;;  %s45_s1 = sshll.u32 %s1150_s3, 4  ;;  %s46_s1 = int_to_ptr.hbm [resolvable:$true] %s45_s1 }
   0x7   :  { %s19_s29 = sshll.u32 %s969_s28, 4  ;;  %s970_s0 = smov [#allocation7]   ;;  %s20_s29 = int_to_ptr.vmem [resolvable:$true] %s19_s29 }
   0x8   :  { %25 = dma.hbm_to_vmem [thread:$0]  %s18_s25, 256, %s20_s29, [#allocation3], %s967_s26, %s967_s26, %s968_s27  }
   0x9   :  { %s47_s7 = sshll.u32 %s970_s0, 4  ;;  %s48_s7 = int_to_ptr.vmem [resolvable:$true] %s47_s7 }
   0xa   :  { %53 = dma.hbm_to_vmem [thread:$0]  %s46_s1, 512, %s48_s7, [#allocation6], %s967_s26, %s967_s26, %s968_s27  }
   0xb   :  { %960 = dma.done.wait [#allocation3], 256  }
   0xc   :  { %961 = vsyncadd [#allocation3], 4294967040 }
   0xd   :  { %962 = dma.done.wait [#allocation6], 1024  }
   0xe   :  { %963 = vsyncadd [#allocation6], 4294966272  ;;  %v73_v0 = vld [vmem:[#allocation5 + $0x18] sm:$0xff]  ;;  %v72_v1 = vld [vmem:[#allocation5 + $0x10] sm:$0xff]  ;;  %vm78_vm0 = vcmask 261120   ;;  %s971_s9 = smov 88  }
   0xf   :  { %97 = vmatpush.msra.mxu0 %v73_v0  ;;  %v71_v2 = vld [vmem:[#allocation5 + $0x8] sm:$0xff]  ;;  %v70_v3 = vld [vmem:[#allocation5] sm:$0xff]  ;;  %v68_v4 = vld [vmem:[#allocation2] sm:$0xff]  ;;  %s972_s10 = smov 96   ;;  %s973_s11 = smov 120   ;;  %vm115_vm1 = vcmask 64512  }
  0x10   :  { %v69_v5 = vld [vmem:[#allocation2 + $0x8] sm:$0xff]  ;;  %v830_v6 = vld [vmem:[%s1149_s2] ss:$0 sm:$0xff]  ;;  %s974_s12 = smov 64   ;;  %s975_s2 = smov 56   ;;  %v108_v34 = vld [vmem:[#allocation7] sm:$0xff] }
  0x11   :  { %98 = vmatpush.msra.mxu0 %v72_v1  ;;  %s976_s13 = smov 80   ;;  %s977_s14 = smov 48  }
  0x12   :  { %s978_s15 = smov 72   ;;  %s979_s16 = smov 112  }
  0x13   :  { %99 = vmatpush.msra.mxu0 %v71_v2  ;;  %s980_s17 = smov 104   ;;  %s981_s18 = smov 40  }
  0x14   :  { %s982_s21 = smov [#allocation8]   ;;  %s765_s25 = sshll.u32 %s1152_s5, 4  ;;  %s766_s25 = int_to_ptr.hbm [resolvable:$true] %s765_s25 }
  0x15   :  { %100 = vmatpush.msra.mxu0 %v70_v3  ;;  %s763_s22 = sshll.u32 %s982_s21, 4  ;;  %s764_s22 = int_to_ptr.vmem [resolvable:$true] %s763_s22 }
  0x16   :  { %779 = vmatmul.msk.f32.vlgmr.msra.gmra.mxu0 %vm78_vm0, %v68_v4 }
  0x17   :  { %421 = vmatpush.msrb.mxu0 %v108_v34 }
  0x1e   :  { %780 = vmatmul.msk.f32.gmra.mxu0 %vm78_vm0, %v69_v5 }
  0x93   :  { %v102_v7 = vpop.f32.mrf.mxu0 }
  0x94   :  { %v1036_v8 = vadd.f32 %v830_v6, %v102_v7 }
  0x96   :  { %243 = vrot.lane.b32.xlu2 %v1036_v8, %s971_s9  ;;  %113 = vrot.lane.b32.xlu0 %v1036_v8, %s972_s10 }
  0x9b   :  { %v105_v9 = vpop.f32.mrf.mxu0 }
  0x9c   :  { %v1040_v10 = vadd.f32 %v830_v6, %v105_v9 }
  0x9e   :  { %141 = vrot.lane.b32.xlu1 %v1040_v10, %s972_s10  ;;  %241 = vrot.lane.b32.xlu2 %v1036_v8, %s973_s11 }
  0xa6   :  { %185 = vrot.lane.b32.xlu1 %v1036_v8, %s974_s12  ;;  %271 = vrot.lane.b32.xlu2 %v1040_v10, %s971_s9 }
  0xf0   :  { %v244_v14 = vpop.permute.xlu2 %243 }
  0xf8   :  { %v242_v15 = vpop.permute.xlu2 %241 }
 0x100   :  { %v272_v16 = vpop.permute.xlu2 %271 }
 0x108   :  { %v114_v11 = vpop.permute.xlu0 %113 }
 0x109   :  { %781 = vmatpush.xpose.msk.msra.mxu1 %vm115_vm1, %v114_v11 }
 0x10c   :  { %782 = vmatmul.msk.f32.vlgmr.msra.gmra.mxu1 %vm115_vm1, %v1036_v8 }
 0x110   :  { %v142_v12 = vpop.permute.xlu1 %141 }
 0x111   :  { %783 = vmatpush.xpose.msk.msra.mxu2 %vm115_vm1, %v142_v12 }
 0x114   :  { %784 = vmatmul.msk.f32.vlgmr.msra.gmra.mxu2 %vm115_vm1, %v1040_v10 }
 0x115   :  { %789 = vmatpush.xpose.msk.msrb.mxu2 %vm115_vm1, %v272_v16 }
 0x118   :  { %v186_v13 = vpop.permute.xlu1 %185 }
 0x119   :  { %206 = vmatpush.msrb.mxu1 %v186_v13 }
 0x11b   :  { %787 = vmatpush.xpose.msk.msra.mxu1 %vm115_vm1, %v244_v14 }
 0x189   :  { %v137_v17 = vpop.f32.mrf.mxu1 }
 0x18a   :  { %v167_v18 = vsel %vm115_vm1, %v137_v17, -inf }
 0x18b   :  { %168 = vmax.xlane.f32.xlu0 %v167_v18 }
 0x197   :  { %v164_v19 = vpop.f32.mrf.mxu2 }
 0x198   :  { %v170_v20 = vsel %vm115_vm1, %v164_v19, -inf }
 0x199   :  { %171 = vmax.xlane.f32.xlu1 %v170_v20 }
 0x19f   :  { %211 = vrot.lane.b32.xlu0 %v1040_v10, %s974_s12 }
 0x1a7   :  { %315 = vrot.lane.b32.xlu0 %v1036_v8, %s975_s2 }
 0x1af   :  { %431 = vrot.lane.b32.xlu0 %v1036_v8, %s976_s13 }
 0x1b2   :  { %269 = vrot.lane.b32.xlu1 %v1040_v10, %s973_s11 }
 0x1fe   :  { %v169_v21 = vpop.xlane.xlu0 %168 }
 0x1ff   :  { %v173_v22 = vsub.f32 %v137_v17, %v169_v21 }
 0x201   :  { %v175_v23 = vmul.f32 1.442695, %v173_v22 }
 0x203   :  { %832 = vpow2.f32 %v175_v23 }
 0x209   :  { %v833_v24 = vpop.eup %832 }
 0x20a   :  { %785 = vmatmul.msk.f32.vlgmr.msrb.gmra.mxu1 %vm115_vm1, %v833_v24  ;;  %v179_v25 = vsel %vm115_vm1, %v833_v24, 0.0 }
 0x20b   :  { %180 = vadd.xlane.f32.xlu0 %v179_v25 }
 0x20c   :  { %v172_v26 = vpop.xlane.xlu1 %171 }
 0x20d   :  { %v174_v27 = vsub.f32 %v164_v19, %v172_v26 }
 0x20f   :  { %v177_v28 = vmul.f32 1.442695, %v174_v27 }
 0x211   :  { %834 = vpow2.f32 %v177_v28  ;;  %v212_v29 = vpop.permute.xlu0 %211 }
 0x212   :  { %232 = vmatpush.msra.mxu3 %v212_v29  ;;  %788 = vmatmul.msk.f32.vlgmr.msra.gmra.mxu1 %vm115_vm1, %v242_v15  ;;  %v109_v29 = vld [vmem:[#allocation7 + $0x8] sm:$0xff] }
 0x213   :  { %392 = vmatpush.msra.mxu2 %v109_v29 }
 0x217   :  { %v835_v30 = vpop.eup %834 }
 0x218   :  { %786 = vmatmul.msk.f32.vlgmr.msra.gmra.mxu3 %vm115_vm1, %v835_v30  ;;  %v182_v44 = vsel %vm115_vm1, %v835_v30, 0.0  ;;  %v110_v30 = vld [vmem:[#allocation7 + $0x10] sm:$0xff] }
 0x219   :  { %v316_v31 = vpop.permute.xlu0 %315 }
 0x21a   :  { %336 = vmatpush.msrb.mxu3 %v316_v31 }
 0x21f   :  { %341 = vrot.lane.b32.xlu0 %v1040_v10, %s975_s2 }
 0x221   :  { %v432_v32 = vpop.permute.xlu0 %431 }
 0x222   :  { %797 = vmatpush.xpose.msk.msra.mxu3 %vm115_vm1, %v432_v32 }
 0x224   :  { %v270_v33 = vpop.permute.xlu1 %269 }
 0x225   :  { %790 = vmatmul.msk.f32.vlgmr.msrb.gmra.mxu2 %vm115_vm1, %v270_v33 }
 0x226   :  { %580 = vmatpush.msrb.mxu2 %v110_v30 }
 0x227   :  { %503 = vrot.lane.b32.xlu0 %v1036_v8, %s977_s14 }
 0x22f   :  { %620 = vrot.lane.b32.xlu0 %v1040_v10, %s978_s15 }
 0x27e   :  { %v181_v35 = vpop.xlane.xlu0 %180 }
 0x27f   :  { %836 = vrcp.f32 %v181_v35 }
 0x285   :  { %v837_v36 = vpop.eup %836 }
 0x287   :  { %v208_v37 = vpop.f32.mrf.mxu1 }
 0x288   :  { %v239_v38 = vmul.f32 %v837_v36, %v208_v37 }
 0x28a   :  { %795 = vmatmul.msk.f32.vlgmr.msrb.gmra.mxu0 %vm115_vm1, %v239_v38 }
 0x28f   :  { %v266_v39 = vpop.f32.mrf.mxu1 }
 0x290   :  { %v297_v40 = vsel %vm115_vm1, %v266_v39, -inf }
 0x291   :  { %298 = vmax.xlane.f32.xlu2 %v297_v40  ;;  %v342_v41 = vpop.permute.xlu0 %341 }
 0x292   :  { %362 = vmatpush.msrb.mxu1 %v342_v41 }
 0x299   :  { %v504_v48 = vpop.permute.xlu0 %503 }
 0x29b   :  { %v234_v58 = vpop.f32.mrf.mxu3 }
 0x2a1   :  { %v621_v51 = vpop.permute.xlu0 %620 }
 0x2a8   :  { %v294_v42 = vpop.f32.mrf.mxu2 }
 0x2a9   :  { %429 = vrot.lane.b32.xlu2 %v1036_v8, %s979_s16  ;;  %v300_v43 = vsel %vm115_vm1, %v294_v42, -inf }
 0x2aa   :  { %301 = vmax.xlane.f32.xlu1 %v300_v43 }
 0x2c3   :  { %457 = vrot.lane.b32.xlu1 %v1040_v10, %s979_s16 }
 0x2d2   :  { %183 = vadd.xlane.f32.xlu2 %v182_v44 }
 0x2ea   :  { %459 = vrot.lane.b32.xlu2 %v1040_v10, %s976_s13 }
 0x2f2   :  { %592 = vrot.lane.b32.xlu2 %v1036_v8, %s978_s15 }
 0x2fa   :  { %618 = vrot.lane.b32.xlu2 %v1040_v10, %s980_s17 }
 0x302   :  { %529 = vrot.lane.b32.xlu2 %v1040_v10, %s977_s14 }
 0x304   :  { %v299_v45 = vpop.xlane.xlu2 %298 }
 0x305   :  { %v303_v46 = vsub.f32 %v266_v39, %v299_v45 }
 0x307   :  { %v305_v47 = vmul.f32 1.442695, %v303_v46  ;;  %v1110_v19 = vpop.f32.mrf.mxu0 }
 0x309   :  { %838 = vpow2.f32 %v305_v47 }
 0x30c   :  { %v430_v50 = vpop.permute.xlu2 %429 }
 0x30f   :  { %v1084_v49 = vpop.eup %838 }
 0x310   :  { %791 = vmatmul.msk.f32.vlgmr.msrb.gmra.mxu3 %vm115_vm1, %v1084_v49  ;;  %v309_v26 = vsel %vm115_vm1, %v1084_v49, 0.0 }
 0x311   :  { %524 = vmatpush.msrb.mxu3 %v504_v48 }
 0x318   :  { %798 = vmatmul.msk.f32.vlgmr.msra.gmra.mxu3 %vm115_vm1, %v430_v50 }
 0x319   :  { %807 = vmatpush.xpose.msk.msra.mxu3 %vm115_vm1, %v621_v51 }
 0x31d   :  { %v302_v52 = vpop.xlane.xlu1 %301 }
 0x31e   :  { %v304_v53 = vsub.f32 %v294_v42, %v302_v52 }
 0x320   :  { %v307_v54 = vmul.f32 1.442695, %v304_v53 }
 0x322   :  { %840 = vpow2.f32 %v307_v54  ;;  %v111_v54 = vld [vmem:[#allocation7 + $0x18] sm:$0xff] }
 0x328   :  { %v841_v55 = vpop.eup %840 }
 0x329   :  { %792 = vmatmul.msk.f32.vlgmr.msrb.gmra.mxu1 %vm115_vm1, %v841_v55  ;;  %v312_v7 = vsel %vm115_vm1, %v841_v55, 0.0 }
 0x335   :  { %v458_v61 = vpop.permute.xlu1 %457 }
 0x345   :  { %v184_v56 = vpop.xlane.xlu2 %183 }
 0x346   :  { %842 = vrcp.f32 %v184_v56 }
 0x34c   :  { %v843_v57 = vpop.eup %842 }
 0x34d   :  { %v460_v59 = vpop.permute.xlu2 %459  ;;  %v240_v60 = vmul.f32 %v843_v57, %v234_v58 }
 0x34e   :  { %799 = vmatpush.xpose.msk.msra.mxu1 %vm115_vm1, %v460_v59 }
 0x34f   :  { %796 = vmatmul.msk.f32.gmra.mxu0 %vm115_vm1, %v240_v60 }
 0x351   :  { %800 = vmatmul.msk.f32.vlgmr.msra.gmra.mxu1 %vm115_vm1, %v458_v61 }
 0x355   :  { %v593_v62 = vpop.permute.xlu2 %592 }
 0x356   :  { %805 = vmatpush.xpose.msk.msra.mxu0 %vm115_vm1, %v593_v62 }
 0x35d   :  { %v619_v63 = vpop.permute.xlu2 %618 }
 0x365   :  { %v530_v0 = vpop.permute.xlu2 %529 }
 0x366   :  { %550 = vmatpush.msrb.mxu1 %v530_v0 }
 0x393   :  { %v1095_v1 = vpop.f32.mrf.mxu3 }
 0x39b   :  { %v454_v2 = vpop.f32.mrf.mxu3 }
 0x39c   :  { %v485_v3 = vsel %vm115_vm1, %v454_v2, -inf }
 0x39d   :  { %486 = vmax.xlane.f32.xlu1 %v485_v3 }
 0x3a6   :  { %v1100_v4 = vpop.f32.mrf.mxu1 }
 0x3b6   :  { %590 = vrot.lane.b32.xlu1 %v1036_v8, %s980_s17 }
 0x3cc   :  { %v1112_v20 = vpop.f32.mrf.mxu0 }
 0x3ce   :  { %v482_v5 = vpop.f32.mrf.mxu1 }
 0x3cf   :  { %v488_v6 = vsel %vm115_vm1, %v482_v5, -inf }
 0x3d0   :  { %489 = vmax.xlane.f32.xlu0 %v488_v6 }
 0x3e4   :  { %664 = vrot.lane.b32.xlu0 %v1036_v8, %s981_s18 }
 0x40e   :  { %313 = vadd.xlane.f32.xlu0 %v312_v7 }
 0x410   :  { %v487_v9 = vpop.xlane.xlu1 %486 }
 0x411   :  { %v491_v11 = vsub.f32 %v454_v2, %v487_v9 }
 0x413   :  { %v493_v12 = vmul.f32 1.442695, %v491_v11 }
 0x415   :  { %844 = vpow2.f32 %v493_v12 }
 0x41b   :  { %v845_v13 = vpop.eup %844 }
 0x41c   :  { %801 = vmatmul.msk.f32.vlgmr.msrb.gmra.mxu3 %vm115_vm1, %v845_v13  ;;  %v497_v27 = vsel %vm115_vm1, %v845_v13, 0.0 }
 0x41d   :  { %741 = vmatpush.msrb.mxu3 %v111_v54 }
 0x424   :  { %808 = vmatmul.msk.f32.vlgmr.msra.gmra.mxu3 %vm115_vm1, %v619_v63 }
 0x428   :  { %v591_v14 = vpop.permute.xlu1 %590 }
 0x429   :  { %806 = vmatmul.msk.f32.vlgmr.msra.gmra.mxu0 %vm115_vm1, %v591_v14 }
 0x443   :  { %v490_v15 = vpop.xlane.xlu0 %489 }
 0x444   :  { %v492_v16 = vsub.f32 %v482_v5, %v490_v15 }
 0x446   :  { %v495_v17 = vmul.f32 1.442695, %v492_v16 }
 0x448   :  { %846 = vpow2.f32 %v495_v17 }
 0x44e   :  { %v847_v8 = vpop.eup %846 }
 0x44f   :  { %802 = vmatmul.msk.f32.vlgmr.msrb.gmra.mxu1 %vm115_vm1, %v847_v8  ;;  %v500_v28 = vsel %vm115_vm1, %v847_v8, 0.0 }
 0x456   :  { %v665_v18 = vpop.permute.xlu0 %664 }
 0x457   :  { %685 = vmatpush.msra.mxu1 %v665_v18 }
 0x481   :  { %v314_v40 = vpop.xlane.xlu0 %313 }
 0x49f   :  { %v526_v21 = vpop.f32.mrf.mxu3 }
 0x4a6   :  { %v615_v22 = vpop.f32.mrf.mxu0 }
 0x4a7   :  { %v643_v23 = vpop.f32.mrf.mxu3  ;;  %v646_v24 = vsel %vm115_vm1, %v615_v22, -inf }
 0x4a8   :  { %647 = vmax.xlane.f32.xlu1 %v646_v24  ;;  %v649_v25 = vsel %vm115_vm1, %v643_v23, -inf }
 0x4a9   :  { %650 = vmax.xlane.f32.xlu2 %v649_v25 }
 0x4b1   :  { %310 = vadd.xlane.f32.xlu2 %v309_v26 }
 0x4b9   :  { %498 = vadd.xlane.f32.xlu2 %v497_v27 }
 0x4c1   :  { %690 = vrot.lane.b32.xlu1 %v1040_v10, %s981_s18  ;;  %501 = vadd.xlane.f32.xlu2 %v500_v28 }
 0x4cc   :  { %v552_v52 = vpop.f32.mrf.mxu1 }
 0x51b   :  { %v648_v31 = vpop.xlane.xlu1 %647 }
 0x51c   :  { %v652_v32 = vsub.f32 %v615_v22, %v648_v31  ;;  %v651_v33 = vpop.xlane.xlu2 %650 }
 0x51d   :  { %v653_v34 = vsub.f32 %v643_v23, %v651_v33 }
 0x51e   :  { %v654_v35 = vmul.f32 1.442695, %v652_v32 }
 0x51f   :  { %v656_v36 = vmul.f32 1.442695, %v653_v34 }
 0x520   :  { %848 = vpow2.f32 %v654_v35 }
 0x521   :  { %850 = vpow2.f32 %v656_v36 }
 0x524   :  { %v311_v37 = vpop.xlane.xlu2 %310 }
 0x525   :  { %852 = vrcp.f32 %v311_v37 }
 0x526   :  { %v849_v38 = vpop.eup %848  ;;  %854 = vrcp.f32 %v314_v40 }
 0x527   :  { %v851_v39 = vpop.eup %850  ;;  %809 = vmatmul.msk.f32.vlgmr.msra.gmra.mxu1 %vm115_vm1, %v849_v38  ;;  %v658_v10 = vsel %vm115_vm1, %v849_v38, 0.0 }
 0x528   :  { %659 = vadd.xlane.f32.xlu1 %v658_v10  ;;  %v661_v41 = vsel %vm115_vm1, %v851_v39, 0.0 }
 0x529   :  { %662 = vadd.xlane.f32.xlu2 %v661_v41 }
 0x52b   :  { %v853_v42 = vpop.eup %852 }
 0x52c   :  { %v369_v43 = vmul.f32 %v853_v42, %v1095_v1  ;;  %v499_v44 = vpop.xlane.xlu2 %498  ;;  %v855_v45 = vpop.eup %854 }
 0x52d   :  { %856 = vrcp.f32 %v499_v44  ;;  %v370_v47 = vmul.f32 %v855_v45, %v1100_v4  ;;  %v831_v4 = vld [vmem:[%s1151_s4] ss:$0 sm:$0xff] }
 0x52e   :  { %793 = vmatmul.msk.f32.vlgmr.msra.gmra.mxu2 %vm115_vm1, %v369_v43 }
 0x533   :  { %v691_v46 = vpop.permute.xlu1 %690  ;;  %v857_v49 = vpop.eup %856 }
 0x534   :  { %711 = vmatpush.msrb.mxu0 %v691_v46  ;;  %v502_v48 = vpop.xlane.xlu2 %501  ;;  %v557_v50 = vmul.f32 %v857_v49, %v526_v21 }
 0x535   :  { %810 = vmatmul.msk.f32.vlgmr.msrb.gmra.mxu0 %vm115_vm1, %v851_v39  ;;  %858 = vrcp.f32 %v502_v48 }
 0x536   :  { %794 = vmatmul.msk.f32.gmra.mxu2 %vm115_vm1, %v370_v47 }
 0x53b   :  { %v859_v51 = vpop.eup %858 }
 0x53c   :  { %v558_v53 = vmul.f32 %v859_v51, %v552_v52 }
 0x53e   :  { %803 = vmatmul.msk.f32.vlgmr.msrb.gmra.mxu2 %vm115_vm1, %v557_v50 }
 0x546   :  { %804 = vmatmul.msk.f32.gmra.mxu2 %vm115_vm1, %v558_v53 }
 0x59b   :  { %v660_v55 = vpop.xlane.xlu1 %659 }
 0x59c   :  { %860 = vrcp.f32 %v660_v55  ;;  %v663_v59 = vpop.xlane.xlu2 %662 }
 0x59d   :  { %862 = vrcp.f32 %v663_v59 }
 0x5a2   :  { %v861_v56 = vpop.eup %860 }
 0x5a3   :  { %v863_v60 = vpop.eup %862 }
 0x5a4   :  { %v687_v57 = vpop.f32.mrf.mxu1 }
 0x5a5   :  { %v718_v58 = vmul.f32 %v861_v56, %v687_v57 }
 0x5a7   :  { %811 = vmatmul.msk.f32.vlgmr.msrb.gmra.mxu3 %vm115_vm1, %v718_v58 }
 0x5b1   :  { %v394_v63 = vpop.f32.mrf.mxu2 }
 0x5b2   :  { %v713_v61 = vpop.f32.mrf.mxu0  ;;  %v424_v2 = vadd.f32 %v1110_v19, %v394_v63 }
 0x5b3   :  { %v719_v62 = vmul.f32 %v863_v60, %v713_v61 }
 0x5b5   :  { %812 = vmatmul.msk.f32.gmra.mxu3 %vm115_vm1, %v719_v62 }
 0x5b9   :  { %v397_v0 = vpop.f32.mrf.mxu2 }
 0x5ba   :  { %v427_v11 = vadd.f32 %v1112_v20, %v397_v0 }
 0x5c1   :  { %v582_v1 = vpop.f32.mrf.mxu2 }
 0x5c2   :  { %v588_v3 = vadd.f32 %v582_v1, %v424_v2 }
 0x5c9   :  { %v585_v9 = vpop.f32.mrf.mxu2 }
 0x5ca   :  { %v589_v12 = vadd.f32 %v585_v9, %v427_v11 }
 0x62a   :  { %v743_v5 = vpop.f32.mrf.mxu3 }
 0x62b   :  { %v749_v6 = vadd.f32 %v743_v5, %v588_v3 }
 0x62d   :  { %v755_v7 = vadd.f32 %v831_v4, %v749_v6 }
 0x62f   :  { %757 = vst.msk [vmem:[#allocation8] sm:$0xff] %vm78_vm0, %v755_v7 }
 0x638   :  { %v746_v13 = vpop.f32.mrf.mxu3 }
 0x639   :  { %v750_v14 = vadd.f32 %v746_v13, %v589_v12 }
 0x63b   :  { %v756_v15 = vadd.f32 %v831_v4, %v750_v14 }
 0x63d   :  { %758 = vst.msk [vmem:[#allocation8 + $0x8] sm:$0xff] %vm78_vm0, %v756_v15 }
 0x63e   :  { %771 = dma.vmem_to_hbm [thread:$0]  %s764_s22, 256, %s766_s25, [#allocation4], %s967_s26, %s967_s26, %s968_s27  }
 0x63f   :  { %964 = dma.done.wait [#allocation4], 256  }
 0x640   :  { %965 = vsyncadd [#allocation4], 4294967040 }
 0x641   :  { %776 = vsyncpa [#allocation3], 1 }
 0x642   :  { %777 = vsyncpa [#allocation6], 1 }
 0x643   :  { %778 = vsyncpa [#allocation4], 1 }

</bundles_post_ra>
